<compile_context>
chip_gen: v7x
topology: tpu7x:2x2x1
jax: 0.10.0
libtpu: 0.0.40
codegen_flags: <defaults>
</compile_context>

<pallas_src>
import jax
import jax.numpy as jnp
import numpy as np
from jax import lax
from jax.experimental import pallas as pl
from jax.experimental.pallas import tpu as pltpu


def _residual_block_kernel(x_ref, w_ref, shift_ref, o_ref, xpad_ref):
    """Fused conv2(3x3, s=1, p=1) with BN scale folded + shift + residual + ReLU.

    x_ref:     (1, H, WC)   f32  lane-folded image (WC = W*C), full H rows
    w_ref:     (3*WC, WC)   bf16 block-banded conv weights (BN scale folded);
                                 rows [0:WC)=dh0, [WC:2WC)=dh1, [2WC:3WC)=dh2
    shift_ref: (1, WC)      f32  BN shift (beta - mean*scale) tiled over W
    o_ref:     (1, TH, WC)  f32  output row-tile
    xpad_ref:  (H+2, WC)    f32  scratch: H-zero-padded copy of the image
    """
    H = x_ref.shape[1]
    WC = x_ref.shape[2]
    TH = o_ref.shape[1]

    # Pad along H in VMEM: zero ONLY the two boundary rows, copy the image.
    zero_row = jnp.zeros((1, WC), dtype=xpad_ref.dtype)
    xpad_ref[pl.ds(0, 1), :] = zero_row
    xpad_ref[pl.ds(H + 1, 1), :] = zero_row
    xpad_ref[pl.ds(1, H), :] = x_ref[0]

    # First output row handled by this grid step (0 when TH == H).
    r0 = pl.multiple_of(pl.program_id(1) * TH, TH)

    rows_up = xpad_ref[pl.ds(r0, TH), :]       # global rows r0-1 .. r0+TH-2
    rows_mid = xpad_ref[pl.ds(r0 + 1, TH), :]  # global rows r0   .. r0+TH-1
    rows_dn = xpad_ref[pl.ds(r0 + 2, TH), :]   # global rows r0+1 .. r0+TH

    # Single K = 3*WC MXU contraction (bf16 operands, f32 accumulation).
    lhs = jnp.concatenate([rows_up, rows_mid, rows_dn],
                          axis=1).astype(jnp.bfloat16)
    acc = jnp.dot(lhs, w_ref[...], preferred_element_type=jnp.float32)

    # bn1 shift + residual shortcut + ReLU, all in f32 (v5e has no bf16 VPU).
    y = acc + shift_ref[...] + x_ref[0, pl.ds(r0, TH), :]
    o_ref[0] = jnp.maximum(y, 0.0).astype(o_ref.dtype)


def _banded_conv_weights(w_hwio, W, scale, dtype):
    """(3, 3, Cin, Cout) -> (3*W*Cin, W*Cout) block-banded weight matrix.

    Per dh: M[dh][wi*Cin+ci, wo*Cout+co] = w_hwio[dh, dw, ci, co] * scale[co]
    with wi = wo + dw - 1 and zero outside the band; this encodes both the dw
    tap shift and the W-edge zero padding of a padding=1 conv.  The three
    per-dh matrices are stacked along K so the whole row-conv becomes a single
    full-width MXU contraction.  BN scale is applied per output channel in f32
    BEFORE the bf16 cast (no double rounding).
    """
    scale_cols = jnp.tile(scale.astype(jnp.float32), W)[None, :]  # (1, W*Cout)
    mats = []
    for dh in range(3):
        m = 0.0
        for dw in range(3):
            m = m + jnp.kron(jnp.eye(W, k=1 - dw, dtype=jnp.float32),
                             w_hwio[dh, dw].astype(jnp.float32))
        mats.append(m * scale_cols)
    return jnp.concatenate(mats, axis=0).astype(dtype)   # (3*W*Cin, W*Cout)


@jax.jit
def residual_block_forward(x_nchw, w_hwio, gamma, beta, running_mean,
                           running_var, eps=1e-5):
    """x_nchw: (N, C, H, W) float32.  Returns (N, C, H, W)."""
    N, C, H, W = x_nchw.shape
    WC = W * C

    # One grid step per image when N >= 2; when N == 1, split H in two so a
    # dual-TensorCore chip (v7x) still sees >= 2 independent 'parallel' steps.
    if N >= 2:
        TH = H
    else:
        assert H % 2 == 0, "H must be even for the single-image split"
        TH = H // 2
    assert H % TH == 0

    # One boundary layout transform: NCHW -> lane-folded (N, H, W*C).
    x = jnp.transpose(x_nchw, (0, 2, 3, 1)).reshape(N, H, WC)

    # bn1 folded into a per-channel affine (eval mode).  The scale is folded
    # into the conv weights (in f32, pre-bf16-cast); only the shift remains a
    # kernel input, tiled across the W lanes.
    scale = gamma / jnp.sqrt(running_var + eps)
    shift = beta - running_mean * scale
    shift_wc = jnp.tile(shift, W).reshape(1, WC).astype(jnp.float32)

    # conv2 weights (BN scale folded) as one bf16 (3*WC, WC) banded matrix.
    w_band = _banded_conv_weights(w_hwio, W, scale, jnp.bfloat16)

    out = pl.pallas_call(
        _residual_block_kernel,
        out_shape=jax.ShapeDtypeStruct((N, H, WC), x_nchw.dtype),
        grid_spec=pltpu.PrefetchScalarGridSpec(
            num_scalar_prefetch=0,
            grid=(N, H // TH),
            in_specs=[
                # Full image per batch; index_map ignores h -> DMA'd once per n.
                pl.BlockSpec((1, H, WC), lambda n, h: (n, 0, 0)),
                pl.BlockSpec((3 * WC, WC), lambda n, h: (0, 0)),
                pl.BlockSpec((1, WC), lambda n, h: (0, 0)),
            ],
            out_specs=pl.BlockSpec((1, TH, WC), lambda n, h: (n, h, 0)),
            scratch_shapes=[pltpu.VMEM((H + 2, WC), jnp.float32)],
        ),
        compiler_params=pltpu.CompilerParams(
            dimension_semantics=("parallel", "parallel"),
            vmem_limit_bytes=32 * 1024 * 1024),
    )(x, w_band, shift_wc)

    # lane-folded -> NCHW to match the PyTorch output layout.
    return jnp.transpose(out.reshape(N, H, W, C), (0, 3, 1, 2))


def _reference_forward(x_nchw, w_hwio, gamma, beta, running_mean, running_var,
                       eps=1e-5):
    """Pure-JAX f32 reference: relu(bn1(conv2(x)) + x), eval-mode BN."""
    x = jnp.transpose(x_nchw, (0, 2, 3, 1))
    conv = lax.conv_general_dilated(
        x, w_hwio, window_strides=(1, 1), padding="SAME",
        dimension_numbers=("NHWC", "HWIO", "NHWC"))
    scale = gamma / jnp.sqrt(running_var + eps)
    shift = beta - running_mean * scale
    out = conv * scale + shift + x
    return jnp.transpose(jnp.maximum(out, 0.0), (0, 3, 1, 2))


if __name__ == "__main__":
    # Default ResidualBlock config: in_channels == out_channels, stride=1,
    # down_sample=False.  W*C = 16*8 = 128 -> exactly one full lane group.
    N, C, H, W = 2, 8, 16, 16

    key = jax.random.PRNGKey(0)
    k_x, k_w, k_g, k_b, k_m, k_v = jax.random.split(key, 6)

    x = jax.random.normal(k_x, (N, C, H, W), dtype=jnp.float32)

    # conv2 weights generated directly in HWIO layout.
    fan_in = C * 3 * 3
    bound = 1.0 / np.sqrt(fan_in)
    w_hwio = jax.random.uniform(k_w, (3, 3, C, C), dtype=jnp.float32,
                                minval=-bound, maxval=bound)

    # bn1 parameters (non-trivial so the affine path is exercised).
    gamma = 1.0 + 0.1 * jax.random.normal(k_g, (C,), dtype=jnp.float32)
    beta = 0.1 * jax.random.normal(k_b, (C,), dtype=jnp.float32)
    running_mean = 0.1 * jax.random.normal(k_m, (C,), dtype=jnp.float32)
    running_var = jnp.abs(1.0 + 0.1 * jax.random.normal(k_v, (C,),
                                                        dtype=jnp.float32))

    out = jax.block_until_ready(
        residual_block_forward(x, w_hwio, gamma, beta, running_mean,
                               running_var))
    ref = jax.block_until_ready(
        _reference_forward(x, w_hwio, gamma, beta, running_mean, running_var))

    # bf16 MXU operands -> relaxed tolerance against the f32 reference.
    np.testing.assert_allclose(np.asarray(out), np.asarray(ref),
                               rtol=5e-2, atol=5e-2)
    assert out.shape == (N, C, H, W)
    print("KERNEL_OK")
</pallas_src>

<mosaic_0001>
module attributes {stable_mosaic.version = 11 : i64} {
  func.func @_residual_block_kernel(%arg0: i32, %arg1: i32, %arg2: memref<1x16x128xf32, #tpu.memory_space<vmem>>, %arg3: memref<384x128xbf16, #tpu.memory_space<vmem>>, %arg4: memref<1x128xf32, #tpu.memory_space<vmem>>, %arg5: memref<1x16x128xf32, #tpu.memory_space<vmem>>, %arg6: memref<18x128xf32, #tpu.memory_space<vmem>>) attributes {dimension_semantics = [#tpu.dimension_semantics<parallel>, #tpu.dimension_semantics<parallel>], iteration_bounds = array<i64: 2, 1>, scalar_prefetch = 0 : i64, scratch_operands = 1 : i64, tpu.core_type = #tpu.core_type<tc>, window_params = [{transform_indices = @transform_0, window_bounds = array<i64: 1, 16, 128>}, {pipeline_mode = #tpu.pipeline_mode<synchronous>, transform_indices = @transform_1, window_bounds = array<i64: 384, 128>}, {pipeline_mode = #tpu.pipeline_mode<synchronous>, transform_indices = @transform_2, window_bounds = array<i64: 1, 128>}, {transform_indices = @transform_3, window_bounds = array<i64: 1, 16, 128>}]} {
    %cst = arith.constant 0.000000e+00 : f32
    %0 = vector.broadcast %cst : f32 to vector<1x128xf32>
    %c0 = arith.constant 0 : index
    %c0_0 = arith.constant 0 : index
    %1 = vector.load %arg6[%c0, %c0_0] : memref<18x128xf32, #tpu.memory_space<vmem>>, vector<1x128xf32>
    tpu.vector_store %arg6[%c0, %c0_0], %0 {strides = array<i32>} : memref<18x128xf32, #tpu.memory_space<vmem>>, vector<1x128xf32>,
    %c17 = arith.constant 17 : index
    %c0_1 = arith.constant 0 : index
    %2 = vector.load %arg6[%c17, %c0_1] : memref<18x128xf32, #tpu.memory_space<vmem>>, vector<1x128xf32>
    tpu.vector_store %arg6[%c17, %c0_1], %0 {strides = array<i32>} : memref<18x128xf32, #tpu.memory_space<vmem>>, vector<1x128xf32>,
    %c0_2 = arith.constant 0 : index
    %c0_3 = arith.constant 0 : index
    %c0_4 = arith.constant 0 : index
    %3 = vector.load %arg2[%c0_2, %c0_3, %c0_4] : memref<1x16x128xf32, #tpu.memory_space<vmem>>, vector<1x16x128xf32>
    %4 = vector.shape_cast %3 : vector<1x16x128xf32> to vector<16x128xf32>
    %c1 = arith.constant 1 : index
    %c0_5 = arith.constant 0 : index
    %5 = vector.load %arg6[%c1, %c0_5] : memref<18x128xf32, #tpu.memory_space<vmem>>, vector<16x128xf32>
    tpu.vector_store %arg6[%c1, %c0_5], %4 {strides = array<i32>} : memref<18x128xf32, #tpu.memory_space<vmem>>, vector<16x128xf32>,
    %c16_i32 = arith.constant 16 : i32
    %6 = arith.muli %arg1, %c16_i32 : i32
    %7 = tpu.assume_multiple %6, 16 : i32
    %8 = arith.index_cast %7 : i32 to index
    %c0_6 = arith.constant 0 : index
    %9 = vector.load %arg6[%8, %c0_6] : memref<18x128xf32, #tpu.memory_space<vmem>>, vector<16x128xf32>
    %c1_i32 = arith.constant 1 : i32
    %10 = arith.addi %7, %c1_i32 : i32
    %11 = arith.index_cast %10 : i32 to index
    %c0_7 = arith.constant 0 : index
    %12 = vector.load %arg6[%11, %c0_7] : memref<18x128xf32, #tpu.memory_space<vmem>>, vector<16x128xf32>
    %c2_i32 = arith.constant 2 : i32
    %13 = arith.addi %7, %c2_i32 : i32
    %14 = arith.index_cast %13 : i32 to index
    %c0_8 = arith.constant 0 : index
    %15 = vector.load %arg6[%14, %c0_8] : memref<18x128xf32, #tpu.memory_space<vmem>>, vector<16x128xf32>
    %16 = tpu.concatenate %9, %12, %15 in 1 : vector<16x128xf32>, vector<16x128xf32>, vector<16x128xf32> -> vector<16x384xf32>
    %17 = arith.truncf %16 : vector<16x384xf32> to vector<16x384xbf16>
    %c0_9 = arith.constant 0 : index
    %c0_10 = arith.constant 0 : index
    %18 = vector.load %arg3[%c0_9, %c0_10] : memref<384x128xbf16, #tpu.memory_space<vmem>>, vector<384x128xbf16>
    %cst_11 = arith.constant dense<0.000000e+00> : vector<16x128xf32>
    %19 = tpu.matmul %17, %18, %cst_11 {dimension_numbers = #tpu.dot_dimension_numbers<[1], [0], [0], [1], [0, 0, 1, 1], [], []>} : vector<16x384xbf16>, vector<384x128xbf16>, vector<16x128xf32> -> vector<16x128xf32>
    %c0_12 = arith.constant 0 : index
    %c0_13 = arith.constant 0 : index
    %20 = vector.load %arg4[%c0_12, %c0_13] : memref<1x128xf32, #tpu.memory_space<vmem>>, vector<1x128xf32>
    %21 = vector.broadcast %20 : vector<1x128xf32> to vector<16x128xf32>
    %22 = arith.addf %19, %21 : vector<16x128xf32>
    %c0_14 = arith.constant 0 : index
    %23 = arith.index_cast %7 : i32 to index
    %c0_15 = arith.constant 0 : index
    %24 = vector.load %arg2[%c0_14, %23, %c0_15] : memref<1x16x128xf32, #tpu.memory_space<vmem>>, vector<1x16x128xf32>
    %25 = vector.shape_cast %24 : vector<1x16x128xf32> to vector<16x128xf32>
    %26 = arith.addf %22, %25 : vector<16x128xf32>
    %cst_16 = arith.constant 0.000000e+00 : f32
    %27 = vector.broadcast %cst_16 : f32 to vector<16x128xf32>
    %28 = arith.maximumf %26, %27 : vector<16x128xf32>
    %c0_17 = arith.constant 0 : index
    %c0_18 = arith.constant 0 : index
    %c0_19 = arith.constant 0 : index
    %29 = vector.load %arg5[%c0_17, %c0_18, %c0_19] : memref<1x16x128xf32, #tpu.memory_space<vmem>>, vector<1x16x128xf32>
    %30 = vector.shape_cast %29 : vector<1x16x128xf32> to vector<16x128xf32>
    %31 = vector.shape_cast %28 : vector<16x128xf32> to vector<1x16x128xf32>
    tpu.vector_store %arg5[%c0_17, %c0_18, %c0_19], %31 {strides = array<i32>} : memref<1x16x128xf32, #tpu.memory_space<vmem>>, vector<1x16x128xf32>,
    return
  }
  func.func @transform_0(%arg0: i32, %arg1: i32) -> (i32, i32, i32) {
    %c0_i32 = arith.constant 0 : i32
    %c0_i32_0 = arith.constant 0 : i32
    %c0_i32_1 = arith.constant 0 : i32
    return %arg0, %c0_i32, %c0_i32_0 : i32, i32, i32
  }
  func.func @transform_1(%arg0: i32, %arg1: i32) -> (i32, i32) {
    %c0_i32 = arith.constant 0 : i32
    %c0_i32_0 = arith.constant 0 : i32
    %c0_i32_1 = arith.constant 0 : i32
    return %c0_i32, %c0_i32_0 : i32, i32
  }
  func.func @transform_2(%arg0: i32, %arg1: i32) -> (i32, i32) {
    %c0_i32 = arith.constant 0 : i32
    %c0_i32_0 = arith.constant 0 : i32
    %c0_i32_1 = arith.constant 0 : i32
    return %c0_i32, %c0_i32_0 : i32, i32
  }
  func.func @transform_3(%arg0: i32, %arg1: i32) -> (i32, i32, i32) {
    %c0_i32 = arith.constant 0 : i32
    %c0_i32_0 = arith.constant 0 : i32
    return %arg0, %arg1, %c0_i32 : i32, i32, i32
  }
}

</mosaic_0001>

<bundles_post_ra>
// kernel: tile.18
= control target key start
LH: loop header
LB: loop body
LE: loop exit
PB: predicated region body
PF: predicated region fallthrough
CT: control target
= control target key end

     0   :  { %s28_s0 = inlined_call_operand.vmem [shape: f32[8], index: 0, kind: input, shape index: {}]   ;;  %s29_s1 = inlined_call_operand.vmem [shape: f32[16,8], index: 1, kind: output, shape index: {}]  }
   0x1   :  { %v4_v0 = vld [vmem:[%s28_s0] ss:$0 sm:$0xff] }
   0x2   :  { %5 = vst [vmem:[%s29_s1] sm:$0xff] %v4_v0  ;;  %8 = vst [vmem:[%s29_s1 + $0x8] sm:$0xff] %v4_v0 }

// kernel: mul.29
= control target key start
LH: loop header
LB: loop body
LE: loop exit
PB: predicated region body
PF: predicated region fallthrough
CT: control target
= control target key end

     0   :  { %s131_s10 = smov 120   ;;  %s132_s11 = smov 104   ;;  %vm3_vm0 = vcmask 64512   ;;  %vm9_vm1 = vcmask 1048512   ;;  %vm15_vm2 = vcmask 982912   ;;  %vm21_vm3 = vcmask 917312   ;;  %s207_s0 = inlined_call_operand.vmem [shape: f32[16,8], index: 0, kind: input, shape index: {}]   ;;  %s208_s1 = inlined_call_operand.vmem [shape: f32[128], index: 1, kind: output, shape index: {}]  }
   0x1   :  { %v101_v0 = vld [vmem:[%s207_s0 + $0xf] sm:$0x1]   ;;  %v103_v1 = vld [vmem:[%s207_s0 + $0xd] sm:$0x1]   ;;  %v102_v2 = vld [vmem:[%s207_s0 + $0xe] sm:$0x1]  }
   0x2   :  { %7 = vrot.lane.b32.xlu0 %v101_v0, %s131_s10  ;;  %19 = vrot.lane.b32.xlu1 %v103_v1, %s132_s11  ;;  %v104_v3 = vld [vmem:[%s207_s0 + $0xc] sm:$0x1]   ;;  %s133_s16 = smov 112   ;;  %s134_s17 = smov 96   ;;  %v105_v4 = vld [vmem:[%s207_s0 + $0xb] sm:$0x1]  }
   0x3   :  { %v106_v5 = vld [vmem:[%s207_s0 + $0xa] sm:$0x1]   ;;  %v2_v6 = vld [vmem:[%s207_s0] sm:$0x1]   ;;  %s135_s24 = smov 88   ;;  %s136_s25 = smov 80  }
   0x4   :  { %4 = vst.msk [vmem:[#allocation0] sm:$0x1] %vm3_vm0, %v2_v6   ;;  %v107_v7 = vld [vmem:[%s207_s0 + $0x9] sm:$0x1]   ;;  %v108_v8 = vld [vmem:[%s207_s0 + $0x8] sm:$0x1]  }
   0x5   :  { %s137_s30 = smov 72   ;;  %s138_s2 = smov 64   ;;  %v109_v9 = vld [vmem:[%s207_s0 + $0x7] sm:$0x1]   ;;  %v110_v10 = vld [vmem:[%s207_s0 + $0x6] sm:$0x1]  }
   0x6   :  { %13 = vrot.lane.b32.xlu0 %v102_v2, %s133_s16  ;;  %25 = vrot.lane.b32.xlu1 %v104_v3, %s134_s17  ;;  %s139_s7 = smov 56   ;;  %s140_s8 = smov 48   ;;  %v111_v11 = vld [vmem:[%s207_s0 + $0x5] sm:$0x1]   ;;  %v112_v12 = vld [vmem:[%s207_s0 + $0x4] sm:$0x1]  }
   0x7   :  { %s141_s13 = smov 40   ;;  %s142_s14 = smov 32   ;;  %v113_v13 = vld [vmem:[%s207_s0 + $0x3] sm:$0x1]   ;;  %v114_v14 = vld [vmem:[%s207_s0 + $0x2] sm:$0x1]  }
   0x8   :  { %s143_s19 = smov 24   ;;  %s144_s20 = smov 16   ;;  %v115_v15 = vld [vmem:[%s207_s0 + $0x1] sm:$0x1]   ;;  %vm27_vm4 = vcmask 851712   ;;  %vm33_vm5 = vcmask 786112  }
   0x9   :  { %s145_s0 = smov 8   ;;  %vm39_vm6 = vcmask 720512   ;;  %vm45_vm7 = vcmask 654912   ;;  %vm51_vm8 = vcmask 589312   ;;  %vm57_vm9 = vcmask 523712  }
   0xa   :  { %31 = vrot.lane.b32.xlu0 %v105_v4, %s135_s24  ;;  %37 = vrot.lane.b32.xlu1 %v106_v5, %s136_s25  ;;  %vm63_vm10 = vcmask 458112   ;;  %vm69_vm11 = vcmask 392512   ;;  %vm75_vm12 = vcmask 326912   ;;  %vm81_vm13 = vcmask 261312  }
   0xb   :  { %vm87_vm14 = vcmask 195712   ;;  %vm93_vm15 = vcmask 130112  }
   0xe   :  { %43 = vrot.lane.b32.xlu0 %v107_v7, %s137_s30  ;;  %49 = vrot.lane.b32.xlu1 %v108_v8, %s138_s2 }
  0x12   :  { %55 = vrot.lane.b32.xlu0 %v109_v9, %s139_s7  ;;  %61 = vrot.lane.b32.xlu1 %v110_v10, %s140_s8 }
  0x16   :  { %67 = vrot.lane.b32.xlu0 %v111_v11, %s141_s13  ;;  %73 = vrot.lane.b32.xlu1 %v112_v12, %s142_s14 }
  0x1a   :  { %79 = vrot.lane.b32.xlu0 %v113_v13, %s143_s19  ;;  %85 = vrot.lane.b32.xlu1 %v114_v14, %s144_s20 }
  0x1e   :  { %91 = vrot.lane.b32.xlu0 %v115_v15, %s145_s0 }
  0x74   :  { %v8_v16 = vpop.permute.xlu0 %7   ;;  %v20_v17 = vpop.permute.xlu1 %19  }
  0x75   :  { %10 = vst.msk [vmem:[#allocation0] sm:$0x1] %vm9_vm1, %v8_v16  }
  0x78   :  { %v14_v18 = vpop.permute.xlu0 %13   ;;  %v26_v19 = vpop.permute.xlu1 %25  }
  0x79   :  { %16 = vst.msk [vmem:[#allocation0] sm:$0x1] %vm15_vm2, %v14_v18  }
  0x7a   :  { %22 = vst.msk [vmem:[#allocation0] sm:$0x1] %vm21_vm3, %v20_v17  }
  0x7b   :  { %28 = vst.msk [vmem:[#allocation0] sm:$0x1] %vm27_vm4, %v26_v19  }
  0x7c   :  { %v32_v20 = vpop.permute.xlu0 %31   ;;  %v38_v21 = vpop.permute.xlu1 %37  }
  0x7d   :  { %34 = vst.msk [vmem:[#allocation0] sm:$0x1] %vm33_vm5, %v32_v20  }
  0x7e   :  { %40 = vst.msk [vmem:[#allocation0] sm:$0x1] %vm39_vm6, %v38_v21  }
  0x80   :  { %v44_v22 = vpop.permute.xlu0 %43   ;;  %v50_v23 = vpop.permute.xlu1 %49  }
  0x81   :  { %46 = vst.msk [vmem:[#allocation0] sm:$0x1] %vm45_vm7, %v44_v22  }
  0x82   :  { %52 = vst.msk [vmem:[#allocation0] sm:$0x1] %vm51_vm8, %v50_v23  }
  0x84   :  { %v56_v24 = vpop.permute.xlu0 %55   ;;  %v62_v25 = vpop.permute.xlu1 %61  }
  0x85   :  { %58 = vst.msk [vmem:[#allocation0] sm:$0x1] %vm57_vm9, %v56_v24  }
  0x86   :  { %64 = vst.msk [vmem:[#allocation0] sm:$0x1] %vm63_vm10, %v62_v25  }
  0x88   :  { %v68_v26 = vpop.permute.xlu0 %67   ;;  %v74_v27 = vpop.permute.xlu1 %73  }
  0x89   :  { %70 = vst.msk [vmem:[#allocation0] sm:$0x1] %vm69_vm11, %v68_v26  }
  0x8a   :  { %76 = vst.msk [vmem:[#allocation0] sm:$0x1] %vm75_vm12, %v74_v27  }
  0x8c   :  { %v80_v28 = vpop.permute.xlu0 %79   ;;  %v86_v29 = vpop.permute.xlu1 %85  }
  0x8d   :  { %82 = vst.msk [vmem:[#allocation0] sm:$0x1] %vm81_vm13, %v80_v28  }
  0x8e   :  { %88 = vst.msk [vmem:[#allocation0] sm:$0x1] %vm87_vm14, %v86_v29  }
  0x90   :  { %v92_v30 = vpop.permute.xlu0 %91  }
  0x91   :  { %94 = vst.msk [vmem:[#allocation0] sm:$0x1] %vm93_vm15, %v92_v30  }
  0x98   :  { %v98_v31 = vld [vmem:[#allocation0] sm:$0x1] }
  0x99   :  { %100 = vst [vmem:[%s208_s1] sm:$0x1] %v98_v31 }

// kernel: tile.14
= control target key start
LH: loop header
LB: loop body
LE: loop exit
PB: predicated region body
PF: predicated region fallthrough
CT: control target
= control target key end

     0   :  { %s131_s10 = smov 120   ;;  %s132_s11 = smov 104   ;;  %vm3_vm0 = vcmask 64512   ;;  %vm9_vm1 = vcmask 1048512   ;;  %vm15_vm2 = vcmask 982912   ;;  %vm21_vm3 = vcmask 917312   ;;  %s207_s0 = inlined_call_operand.vmem [shape: f32[16,8], index: 0, kind: input, shape index: {}]   ;;  %s208_s1 = inlined_call_operand.vmem [shape: f32[1,128], index: 1, kind: output, shape index: {}]  }
   0x1   :  { %v101_v0 = vld [vmem:[%s207_s0 + $0xf] sm:$0x1]   ;;  %v103_v1 = vld [vmem:[%s207_s0 + $0xd] sm:$0x1]   ;;  %v102_v2 = vld [vmem:[%s207_s0 + $0xe] sm:$0x1]  }
   0x2   :  { %7 = vrot.lane.b32.xlu0 %v101_v0, %s131_s10  ;;  %19 = vrot.lane.b32.xlu1 %v103_v1, %s132_s11  ;;  %v104_v3 = vld [vmem:[%s207_s0 + $0xc] sm:$0x1]   ;;  %s133_s16 = smov 112   ;;  %s134_s17 = smov 96   ;;  %v105_v4 = vld [vmem:[%s207_s0 + $0xb] sm:$0x1]  }
   0x3   :  { %v106_v5 = vld [vmem:[%s207_s0 + $0xa] sm:$0x1]   ;;  %v2_v6 = vld [vmem:[%s207_s0] sm:$0x1]   ;;  %s135_s24 = smov 88   ;;  %s136_s25 = smov 80  }
   0x4   :  { %4 = vst.msk [vmem:[#allocation0] sm:$0x1] %vm3_vm0, %v2_v6   ;;  %v107_v7 = vld [vmem:[%s207_s0 + $0x9] sm:$0x1]   ;;  %v108_v8 = vld [vmem:[%s207_s0 + $0x8] sm:$0x1]  }
   0x5   :  { %s137_s30 = smov 72   ;;  %s138_s2 = smov 64   ;;  %v109_v9 = vld [vmem:[%s207_s0 + $0x7] sm:$0x1]   ;;  %v110_v10 = vld [vmem:[%s207_s0 + $0x6] sm:$0x1]  }
   0x6   :  { %13 = vrot.lane.b32.xlu0 %v102_v2, %s133_s16  ;;  %25 = vrot.lane.b32.xlu1 %v104_v3, %s134_s17  ;;  %s139_s7 = smov 56   ;;  %s140_s8 = smov 48   ;;  %v111_v11 = vld [vmem:[%s207_s0 + $0x5] sm:$0x1]   ;;  %v112_v12 = vld [vmem:[%s207_s0 + $0x4] sm:$0x1]  }
   0x7   :  { %s141_s13 = smov 40   ;;  %s142_s14 = smov 32   ;;  %v113_v13 = vld [vmem:[%s207_s0 + $0x3] sm:$0x1]   ;;  %v114_v14 = vld [vmem:[%s207_s0 + $0x2] sm:$0x1]  }
   0x8   :  { %s143_s19 = smov 24   ;;  %s144_s20 = smov 16   ;;  %v115_v15 = vld [vmem:[%s207_s0 + $0x1] sm:$0x1]   ;;  %vm27_vm4 = vcmask 851712   ;;  %vm33_vm5 = vcmask 786112  }
   0x9   :  { %s145_s0 = smov 8   ;;  %vm39_vm6 = vcmask 720512   ;;  %vm45_vm7 = vcmask 654912   ;;  %vm51_vm8 = vcmask 589312   ;;  %vm57_vm9 = vcmask 523712  }
   0xa   :  { %31 = vrot.lane.b32.xlu0 %v105_v4, %s135_s24  ;;  %37 = vrot.lane.b32.xlu1 %v106_v5, %s136_s25  ;;  %vm63_vm10 = vcmask 458112   ;;  %vm69_vm11 = vcmask 392512   ;;  %vm75_vm12 = vcmask 326912   ;;  %vm81_vm13 = vcmask 261312  }
   0xb   :  { %vm87_vm14 = vcmask 195712   ;;  %vm93_vm15 = vcmask 130112  }
   0xe   :  { %43 = vrot.lane.b32.xlu0 %v107_v7, %s137_s30  ;;  %49 = vrot.lane.b32.xlu1 %v108_v8, %s138_s2 }
  0x12   :  { %55 = vrot.lane.b32.xlu0 %v109_v9, %s139_s7  ;;  %61 = vrot.lane.b32.xlu1 %v110_v10, %s140_s8 }
  0x16   :  { %67 = vrot.lane.b32.xlu0 %v111_v11, %s141_s13  ;;  %73 = vrot.lane.b32.xlu1 %v112_v12, %s142_s14 }
  0x1a   :  { %79 = vrot.lane.b32.xlu0 %v113_v13, %s143_s19  ;;  %85 = vrot.lane.b32.xlu1 %v114_v14, %s144_s20 }
  0x1e   :  { %91 = vrot.lane.b32.xlu0 %v115_v15, %s145_s0 }
  0x74   :  { %v8_v16 = vpop.permute.xlu0 %7   ;;  %v20_v17 = vpop.permute.xlu1 %19  }
  0x75   :  { %10 = vst.msk [vmem:[#allocation0] sm:$0x1] %vm9_vm1, %v8_v16  }
  0x78   :  { %v14_v18 = vpop.permute.xlu0 %13   ;;  %v26_v19 = vpop.permute.xlu1 %25  }
  0x79   :  { %16 = vst.msk [vmem:[#allocation0] sm:$0x1] %vm15_vm2, %v14_v18  }
  0x7a   :  { %22 = vst.msk [vmem:[#allocation0] sm:$0x1] %vm21_vm3, %v20_v17  }
  0x7b   :  { %28 = vst.msk [vmem:[#allocation0] sm:$0x1] %vm27_vm4, %v26_v19  }
  0x7c   :  { %v32_v20 = vpop.permute.xlu0 %31   ;;  %v38_v21 = vpop.permute.xlu1 %37  }
  0x7d   :  { %34 = vst.msk [vmem:[#allocation0] sm:$0x1] %vm33_vm5, %v32_v20  }
  0x7e   :  { %40 = vst.msk [vmem:[#allocation0] sm:$0x1] %vm39_vm6, %v38_v21  }
  0x80   :  { %v44_v22 = vpop.permute.xlu0 %43   ;;  %v50_v23 = vpop.permute.xlu1 %49  }
  0x81   :  { %46 = vst.msk [vmem:[#allocation0] sm:$0x1] %vm45_vm7, %v44_v22  }
  0x82   :  { %52 = vst.msk [vmem:[#allocation0] sm:$0x1] %vm51_vm8, %v50_v23  }
  0x84   :  { %v56_v24 = vpop.permute.xlu0 %55   ;;  %v62_v25 = vpop.permute.xlu1 %61  }
  0x85   :  { %58 = vst.msk [vmem:[#allocation0] sm:$0x1] %vm57_vm9, %v56_v24  }
  0x86   :  { %64 = vst.msk [vmem:[#allocation0] sm:$0x1] %vm63_vm10, %v62_v25  }
  0x88   :  { %v68_v26 = vpop.permute.xlu0 %67   ;;  %v74_v27 = vpop.permute.xlu1 %73  }
  0x89   :  { %70 = vst.msk [vmem:[#allocation0] sm:$0x1] %vm69_vm11, %v68_v26  }
  0x8a   :  { %76 = vst.msk [vmem:[#allocation0] sm:$0x1] %vm75_vm12, %v74_v27  }
  0x8c   :  { %v80_v28 = vpop.permute.xlu0 %79   ;;  %v86_v29 = vpop.permute.xlu1 %85  }
  0x8d   :  { %82 = vst.msk [vmem:[#allocation0] sm:$0x1] %vm81_vm13, %v80_v28  }
  0x8e   :  { %88 = vst.msk [vmem:[#allocation0] sm:$0x1] %vm87_vm14, %v86_v29  }
  0x90   :  { %v92_v30 = vpop.permute.xlu0 %91  }
  0x91   :  { %94 = vst.msk [vmem:[#allocation0] sm:$0x1] %vm93_vm15, %v92_v30  }
  0x98   :  { %v98_v31 = vld [vmem:[#allocation0] sm:$0x1] }
  0x99   :  { %100 = vst [vmem:[%s208_s1] sm:$0x1] %v98_v31 }

// kernel: residual_block_forward.1
= control target key start
LH: loop header
LB: loop body
LE: loop exit
PB: predicated region body
PF: predicated region fallthrough
CT: control target
= control target key end

     0   :  { %s786_s12 = smov 0   ;;  %s788_s13 = smov 0   ;;  %s916_s0 = inlined_call_operand.vmem [shape: f32[2,16,128], index: 0, kind: input, shape index: {}]   ;;  %s917_s1 = inlined_call_operand.vmem [shape: bf16[384,128], index: 1, kind: input, shape index: {}]   ;;  %s918_s2 = inlined_call_operand.vmem [shape: f32[1,128], index: 2, kind: input, shape index: {}]   ;;  %s919_s3 = inlined_call_operand.vmem [shape: f32[2,16,128], index: 3, kind: output, shape index: {}]  }
   0x1   :  { %s790_s14 = smov 0  }
   0x2 LB: > { %s25_s15 = sadd.s32 1, %s758_s13  ;;  %p601_p0 = scmp.ge.s32.totalorder %s762_s14, 1  ;;  %s762_s14 = sphi %s790_s14, %s13_s14   ;;  %s758_s13 = sphi %s788_s13, %s921_s13   ;;  %s754_s12 = sphi %s786_s12, %s920_s12  }
   0x3   : > { %p27_p1 = scmp.ge.s32.totalorder %s25_s15, 2  ;;  %p151_p2 = scmp.lt.s32.totalorder %s762_s14, 3 }
   0x5   : > { %s923_s15 = smov (%p27_p1, %s25_s15), 0  ;;  %p152_p3 = pnand %p601_p0, %p151_p2 }
   0x6   : > { %v716_v0 = vld [vmem:[%s917_s1 + $0x40] sm:$0xff] (!%p152_p3)   ;;  %v764_v2 = vmov (!%p152_p3), 0.0   ;;  %v719_v4 = vld [vmem:[%s917_s1 + $0x48] sm:$0xff] (!%p152_p3)   ;;  %vm765_vm0 = vmmov (!%p152_p3), 0   ;;  %v722_v7 = vld [vmem:[%s917_s1 + $0x50] sm:$0xff] (!%p152_p3)   ;;  %p179_p4 = scmp.lt.s32.totalorder (!%p152_p3), %s754_s12, 1 }
   0x7   : > { %155 = sbr.rel (%p152_p3) target bundleno = 265 (0x109), region = 32  ;;  %v717_v1 = vld [vmem:[%s917_s1] sm:$0xff] (!%p152_p3)   ;;  %670 = vmatprep.subr.bf16.mxu1 (!%p152_p3), %v764_v2  ;;  %195 = vst [vmem:[#allocation2] sm:$0x1] (!%p152_p3), %v764_v2  ;;  %196 = vst [vmem:[#allocation2 + $0x11] sm:$0x1] (!%p152_p3), %v764_v2  ;;  %639 = vmatprep.subr.bf16.mxu0 (!%p152_p3), %v716_v0 }
   0x8   : > { %v718_v3 = vld [vmem:[%s917_s1 + $0x80] sm:$0xff] (!%p152_p3)   ;;  %640 = vmatpush3.bf16.msra.mxu0 (!%p152_p3), %v717_v1  ;;  %686 = vmatprep.mubr.msk.bf16.mxu1 (!%p152_p3), %vm765_vm0, %v764_v2  ;;  %v720_v5 = vld [vmem:[%s917_s1 + $0x8] sm:$0xff] (!%p152_p3)   ;;  %v723_v8 = vld [vmem:[%s917_s1 + $0x10] sm:$0xff] (!%p152_p3)  }
   0x9   : > { %671 = vmatpush3.bf16.msra.mxu1 (!%p152_p3), %v718_v3  ;;  %641 = vmatprep.subr.bf16.mxu0 (!%p152_p3), %v719_v4  ;;  %v721_v6 = vld [vmem:[%s917_s1 + $0x88] sm:$0xff] (!%p152_p3)   ;;  %v724_v9 = vld [vmem:[%s917_s1 + $0x90] sm:$0xff] (!%p152_p3)   ;;  %v725_v10 = vld [vmem:[%s917_s1 + $0x58] sm:$0xff] (!%p152_p3)  }
   0xa   : > { %672 = vmatprep.subr.bf16.mxu1 (!%p152_p3), %v764_v2  ;;  %v726_v11 = vld [vmem:[%s917_s1 + $0x18] sm:$0xff] (!%p152_p3)   ;;  %v728_v13 = vld [vmem:[%s917_s1 + $0x60] sm:$0xff] (!%p152_p3)   ;;  %v731_v16 = vld [vmem:[%s917_s1 + $0x68] sm:$0xff] (!%p152_p3)  }
   0xb   : > { %v727_v12 = vld [vmem:[%s917_s1 + $0x98] sm:$0xff] (!%p152_p3)   ;;  %v729_v14 = vld [vmem:[%s917_s1 + $0x20] sm:$0xff] (!%p152_p3)   ;;  %v732_v17 = vld [vmem:[%s917_s1 + $0x28] sm:$0xff] (!%p152_p3)  }
   0xc   : > { %642 = vmatpush3.bf16.msra.mxu0 (!%p152_p3), %v720_v5  ;;  %v730_v15 = vld [vmem:[%s917_s1 + $0xa0] sm:$0xff] (!%p152_p3)   ;;  %v733_v18 = vld [vmem:[%s917_s1 + $0xa8] sm:$0xff] (!%p152_p3)   ;;  %v734_v19 = vld [vmem:[%s917_s1 + $0x70] sm:$0xff] (!%p152_p3)  }
   0xd   : > { %673 = vmatpush3.bf16.msra.mxu1 (!%p152_p3), %v721_v6  ;;  %643 = vmatprep.subr.bf16.mxu0 (!%p152_p3), %v722_v7  ;;  %v735_v20 = vld [vmem:[%s917_s1 + $0x30] sm:$0xff] (!%p152_p3)   ;;  %v737_v24 = vld [vmem:[%s917_s1 + $0x78] sm:$0xff] (!%p152_p3)   ;;  %v610_v36 = vld [vmem:[%s918_s2] ss:$0 sm:$0xff] (!%p152_p3) }
   0xe   : > { %674 = vmatprep.subr.bf16.mxu1 %v764_v2  ;;  %s925_s12 = smov (!%p179_p4, %s754_s12), 1  ;;  %v736_v23 = vld [vmem:[%s917_s1 + $0xb0] sm:$0xff]   ;;  %v738_v26 = vld [vmem:[%s917_s1 + $0x38] sm:$0xff]  }
   0xf   : > { %s637_s25 = sshll.u32 %s925_s12, 4  ;;  %v739_v27 = vld [vmem:[%s917_s1 + $0xb8] sm:$0xff]  }
  0x10   : > { %644 = vmatpush3.bf16.msra.mxu0 %v723_v8  ;;  %s183_s7 = scalar_lea.vmem %s916_s0, %s637_s25  ;;  %s192_s27 = scalar_lea.vmem %s919_s3, %s637_s25 }
  0x11   : > { %675 = vmatpush3.bf16.msra.mxu1 %v724_v9  ;;  %645 = vmatprep.subr.bf16.mxu0 %v725_v10  ;;  %v197_v21 = vld [vmem:[%s183_s7] sm:$0xff]  ;;  %v198_v22 = vld [vmem:[%s183_s7 + $0x8] sm:$0xff] }
  0x12   : > { %676 = vmatprep.subr.bf16.mxu1 %v764_v2  ;;  %199 = vst [vmem:[#allocation2 + $0x1] sm:$0xff] %v197_v21  ;;  %200 = vst [vmem:[#allocation2 + $0x9] sm:$0xff] %v198_v22  ;;  %v214_v25 = vpack.c.bf16 %v198_v22, %v197_v21 }
  0x14   : > { %646 = vmatpush3.bf16.msra.mxu0 %v726_v11  ;;  %447 = vmatprep.mubr.bf16.mxu0 %v214_v25 }
  0x15   : > { %677 = vmatpush3.bf16.msra.mxu1 %v727_v12  ;;  %647 = vmatprep.subr.bf16.mxu0 %v728_v13 }
  0x16   : > { %678 = vmatprep.subr.bf16.mxu1 %v764_v2 }
  0x18   : > { %648 = vmatpush3.bf16.msra.mxu0 %v729_v14 }
  0x19   : > { %679 = vmatpush3.bf16.msra.mxu1 %v730_v15  ;;  %649 = vmatprep.subr.bf16.mxu0 %v731_v16  ;;  %v203_v28 = vld [vmem:[#allocation2] sm:$0xff]  ;;  %v204_v29 = vld [vmem:[#allocation2 + $0x8] sm:$0xff] }
  0x1a   : > { %680 = vmatprep.subr.bf16.mxu1 %v764_v2  ;;  %v608_v30 = vld [vmem:[#allocation2 + $0x2] sm:$0xff]  ;;  %v213_v31 = vpack.c.bf16 %v204_v29, %v203_v28  ;;  %v609_v32 = vld [vmem:[#allocation2 + $0xa] sm:$0xff] }
  0x1b   : > { %v215_v33 = vpack.c.bf16 %v609_v32, %v608_v30 }
  0x1c   : > { %650 = vmatpush3.bf16.msra.mxu0 %v732_v17 }
  0x1d   : > { %681 = vmatpush3.bf16.msra.mxu1 %v733_v18  ;;  %651 = vmatprep.subr.bf16.mxu0 %v734_v19 }
  0x1e   : > { %682 = vmatprep.subr.bf16.mxu1 %v764_v2 }
  0x20   : > { %652 = vmatpush3.bf16.msra.mxu0 %v735_v20 }
  0x21   : > { %683 = vmatpush3.bf16.msra.mxu1 %v736_v23  ;;  %653 = vmatprep.subr.bf16.mxu0 %v737_v24 }
  0x22   : > { %684 = vmatprep.subr.bf16.mxu1 %v764_v2 }
  0x24   : > { %654 = vmatpush3.bf16.msra.mxu0 %v738_v26 }
  0x25   : > { %685 = vmatpush3.bf16.msra.mxu1 %v739_v27 }
  0x27   : > { %448 = vmatmul.mubr.bf16.vlgmr.msra.gmra.mrb[0].mxu0 %v213_v31 }
  0x28   : > { %687 = vmatmul.mubr.bf16.vlgmr.msra.gmra.mrb[0].mxu1 %v215_v33 }
  0xfa   : > { %v655_v34 = vpop.f32.mrb[0].mxu0 }
  0xfb   : > { %v656_v35 = vpop.f32.mrb[1].mxu0  ;;  %v490_v37 = vpop.f32.mrb[0].mxu1 }
  0xfc   : > { %v657_v38 = vadd.f32 %v656_v35, %v655_v34  ;;  %v658_v39 = vpop.f32.mrb[2].mxu0  ;;  %v688_v40 = vpop.f32.mrb[1].mxu1 }
  0xfd   : > { %v659_v41 = vpop.f32.mrb[3].mxu0  ;;  %v493_v42 = vpop.f32.mrb[2].mxu1 }
  0xfe   : > { %v450_v43 = vadd.f32 %v657_v38, %v610_v36  ;;  %v660_v44 = vadd.f32 %v659_v41, %v658_v39  ;;  %v689_v45 = vpop.f32.mrb[3].mxu1 }
 0x100   : > { %v491_v46 = vadd.f32 %v490_v37, %v450_v43  ;;  %v453_v47 = vadd.f32 %v660_v44, %v610_v36 }
 0x102   : > { %v500_v48 = vadd.f32 %v491_v46, %v197_v21  ;;  %v494_v49 = vadd.f32 %v493_v42, %v453_v47 }
 0x104   : > { %v502_v50 = vmax.f32 %v500_v48, 0.0  ;;  %v501_v51 = vadd.f32 %v494_v49, %v198_v22 }
 0x106   : > { %504 = vst [vmem:[%s192_s27] sm:$0xff] %v502_v50  ;;  %v503_v52 = vmax.f32 %v501_v51, 0.0 }
 0x108   : > { %505 = vst [vmem:[%s192_s27 + $0x8] sm:$0xff] %v503_v52 }
 0x109 PF: > { %s13_s14 = sadd.s32 1, %s762_s14   ;;  %s920_s12 = smov %s758_s13 }
 0x10a   : > { %p10_p5 = scmp.ge.s32.totalorder %s13_s14, 4   ;;  %s921_s13 = smov %s923_s15 }
 0x10c   :  { %12 = sbr.rel (!%p10_p5) target bundleno = 2 (0x2), region = 66 }

</bundles_post_ra>
